<compile_context>
chip_gen: v7x
topology: tpu7x:2x2x1
jax: 0.10.0
libtpu: 0.0.40
codegen_flags: <defaults>
</compile_context>

<pallas_src>
import functools
import math

import jax
import jax.numpy as jnp
from jax.experimental import pallas as pl
from jax.experimental.pallas import tpu as pltpu


def _downsample_b_kernel(x_ref, p_ref, o_ref, *, c, inv_area):
    # x_ref: (bn*C, Hs*Ws)    flattened input rows (bn samples x C channels)
    # p_ref: (Hs*Ws, Ho*Wo)   one-hot pooling matrix (1.0 entries)
    # o_ref: (bn, 2C, Ho*Wo)  pooled half + zero half, channel-concatenated
    pooled = jnp.dot(x_ref[...], p_ref[...], preferred_element_type=jnp.float32)
    pooled = (pooled * inv_area).astype(o_ref.dtype)       # (bn*C, Ho*Wo)
    bn = o_ref.shape[0]
    qo = o_ref.shape[2]
    for i in range(bn):                                     # static unroll, bn is small
        o_ref[i, :c, :] = pooled[i * c:(i + 1) * c, :]
    # NOTE: PyTorch's `residual * 0` propagates NaN/Inf from non-finite inputs;
    # we write literal zeros (differs only for non-finite inputs).
    o_ref[:, c:, :] = jnp.zeros((bn, c, qo), o_ref.dtype)


def _pick_bn(n, c, hsws, howo, itemsize, target_bytes=2 * 1024 * 1024):
    """Samples per block: padded-VMEM-aware, sublane-aligned, >=2 grid steps if possible."""
    rup = lambda a, b: -(-a // b) * b
    per_sample = (c * rup(hsws, 128) * itemsize            # input rows
                  + rup(2 * c, 8) * rup(howo, 128) * itemsize   # output slice
                  + c * rup(howo, 128) * 4)                # f32 matmul result
    step = 8 // math.gcd(c, 8)          # smallest bn with (bn*C) % 8 == 0
    if step > n:
        return n                        # one block covering all rows (== full array dim)
    cap = max(1, target_bytes // max(per_sample, 1))
    bn = min(n, cap)
    bn = max(step, (bn // step) * step)                     # keep bn*C sublane-aligned
    while bn > step and -(-n // bn) < 2:                    # prefer >= 2 pipelined steps
        bn -= step
    return bn


def downsample_b(x, stride=2):
    s = int(stride)
    N, C, H, W = x.shape
    Ho, Wo = H // s, W // s
    Hs, Ws = Ho * s, Wo * s                  # AvgPool2d drops partial windows
    if (Hs, Ws) != (H, W):
        x = x[:, :, :Hs, :Ws]
    HsWs, HoWo = Hs * Ws, Ho * Wo
    NC = N * C
    x2 = x.reshape(NC, HsWs)                 # contiguous NCHW -> free reshape

    # One-hot pooling matrix: flat input pixel (h, w) -> flat output pixel (h//s, w//s).
    # Entries are exact 1.0 (also exact in bf16); the 1/s^2 scale is applied in f32
    # inside the kernel (closer to AvgPool2d's sum-then-scale).
    out_idx = (jnp.arange(Hs)[:, None] // s) * Wo + (jnp.arange(Ws)[None, :] // s)
    p = (out_idx.reshape(HsWs, 1) == jnp.arange(HoWo)[None, :]).astype(x.dtype)

    itemsize = jnp.dtype(x.dtype).itemsize
    bn = _pick_bn(N, C, HsWs, HoWo, itemsize)
    grid = (pl.cdiv(N, bn),)

    cost = pl.CostEstimate(
        flops=2 * NC * HsWs * HoWo,
        transcendentals=0,
        bytes_accessed=(NC * HsWs * itemsize            # input read
                        + N * 2 * C * HoWo * itemsize   # output write (both halves)
                        + HsWs * HoWo * itemsize),      # pooling matrix
    )

    out = pl.pallas_call(
        functools.partial(_downsample_b_kernel, c=C, inv_area=1.0 / float(s * s)),
        out_shape=jax.ShapeDtypeStruct((N, 2 * C, HoWo), x.dtype),
        grid=grid,
        in_specs=[
            pl.BlockSpec((bn * C, HsWs), lambda r: (r, 0)),
            pl.BlockSpec((HsWs, HoWo), lambda r: (0, 0)),
        ],
        out_specs=pl.BlockSpec((bn, 2 * C, HoWo), lambda r: (r, 0, 0)),
        compiler_params=pltpu.CompilerParams(
            dimension_semantics=("parallel",),
            # Blocks are budgeted to ~2 MiB padded per buffer; 32 MiB is safe on
            # v5e/v6e (128 MiB physical) and within v7x's 64 MiB physical VMEM.
            vmem_limit_bytes=32 * 1024 * 1024,
        ),
        cost_estimate=cost,
    )(x2, p)

    return out.reshape(N, 2 * C, Ho, Wo)


def _reference_downsample_b(x, stride=2):
    N, C, H, W = x.shape
    s = stride
    Ho, Wo = H // s, W // s
    xr = x[:, :, :Ho * s, :Wo * s].reshape(N, C, Ho, s, Wo, s)
    pooled = xr.mean(axis=(3, 5))
    return jnp.concatenate([pooled, jnp.zeros_like(pooled)], axis=1)


if __name__ == "__main__":
    key = jax.random.PRNGKey(0)
    x = jax.random.normal(key, (2, 4, 16, 16), dtype=jnp.float32)

    out = jax.block_until_ready(downsample_b(x, stride=2))

    ref = _reference_downsample_b(x, stride=2)
    assert out.shape == (2, 8, 8, 8), out.shape
    assert jnp.allclose(out, ref, atol=1e-5, rtol=1e-5), "mismatch vs reference"

    print("KERNEL_OK")
</pallas_src>

<mosaic_0001>
module attributes {stable_mosaic.version = 11 : i64} {
  func.func @_downsample_b_kernel(%arg0: i32, %arg1: memref<8x256xf32, #tpu.memory_space<vmem>>, %arg2: memref<256x64xf32, #tpu.memory_space<vmem>>, %arg3: memref<2x8x64xf32, #tpu.memory_space<vmem>>) attributes {dimension_semantics = [#tpu.dimension_semantics<parallel>], iteration_bounds = array<i64: 1>, scalar_prefetch = 0 : i64, scratch_operands = 0 : i64, tpu.core_type = #tpu.core_type<tc>, window_params = [{transform_indices = @transform_0, window_bounds = array<i64: 8, 256>}, {pipeline_mode = #tpu.pipeline_mode<synchronous>, transform_indices = @transform_1, window_bounds = array<i64: 256, 64>}, {transform_indices = @transform_2, window_bounds = array<i64: 2, 8, 64>}]} {
    %c0 = arith.constant 0 : index
    %c0_0 = arith.constant 0 : index
    %0 = vector.load %arg1[%c0, %c0_0] : memref<8x256xf32, #tpu.memory_space<vmem>>, vector<8x256xf32>
    %c0_1 = arith.constant 0 : index
    %c0_2 = arith.constant 0 : index
    %1 = vector.load %arg2[%c0_1, %c0_2] : memref<256x64xf32, #tpu.memory_space<vmem>>, vector<256x64xf32>
    %cst = arith.constant dense<0.000000e+00> : vector<8x64xf32>
    %2 = tpu.matmul %0, %1, %cst {dimension_numbers = #tpu.dot_dimension_numbers<[1], [0], [0], [1], [0, 0, 1, 1], [], []>} : vector<8x256xf32>, vector<256x64xf32>, vector<8x64xf32> -> vector<8x64xf32>
    %cst_3 = arith.constant 2.500000e-01 : f32
    %3 = vector.broadcast %cst_3 : f32 to vector<8x64xf32>
    %4 = arith.mulf %2, %3 : vector<8x64xf32>
    %5 = vector.extract_strided_slice %4 {offsets = [0, 0], sizes = [4, 64], strides = [1, 1]} : vector<8x64xf32> to vector<4x64xf32>
    %c0_4 = arith.constant 0 : index
    %c0_5 = arith.constant 0 : index
    %c0_6 = arith.constant 0 : index
    %6 = vector.load %arg3[%c0_4, %c0_5, %c0_6] : memref<2x8x64xf32, #tpu.memory_space<vmem>>, vector<1x4x64xf32>
    %7 = vector.shape_cast %6 : vector<1x4x64xf32> to vector<4x64xf32>
    %8 = vector.shape_cast %5 : vector<4x64xf32> to vector<1x4x64xf32>
    tpu.vector_store %arg3[%c0_4, %c0_5, %c0_6], %8 {strides = array<i32>} : memref<2x8x64xf32, #tpu.memory_space<vmem>>, vector<1x4x64xf32>,
    %9 = vector.extract_strided_slice %4 {offsets = [4, 0], sizes = [4, 64], strides = [1, 1]} : vector<8x64xf32> to vector<4x64xf32>
    %c1 = arith.constant 1 : index
    %c0_7 = arith.constant 0 : index
    %c0_8 = arith.constant 0 : index
    %10 = vector.load %arg3[%c1, %c0_7, %c0_8] : memref<2x8x64xf32, #tpu.memory_space<vmem>>, vector<1x4x64xf32>
    %11 = vector.shape_cast %10 : vector<1x4x64xf32> to vector<4x64xf32>
    %12 = vector.shape_cast %9 : vector<4x64xf32> to vector<1x4x64xf32>
    tpu.vector_store %arg3[%c1, %c0_7, %c0_8], %12 {strides = array<i32>} : memref<2x8x64xf32, #tpu.memory_space<vmem>>, vector<1x4x64xf32>,
    %cst_9 = arith.constant 0.000000e+00 : f32
    %13 = vector.broadcast %cst_9 : f32 to vector<2x4x64xf32>
    %c0_10 = arith.constant 0 : index
    %c4 = arith.constant 4 : index
    %c0_11 = arith.constant 0 : index
    %14 = vector.load %arg3[%c0_10, %c4, %c0_11] : memref<2x8x64xf32, #tpu.memory_space<vmem>>, vector<2x4x64xf32>
    tpu.vector_store %arg3[%c0_10, %c4, %c0_11], %13 {strides = array<i32>} : memref<2x8x64xf32, #tpu.memory_space<vmem>>, vector<2x4x64xf32>,
    return
  }
  func.func @transform_0(%arg0: i32) -> (i32, i32) {
    %c0_i32 = arith.constant 0 : i32
    %c0_i32_0 = arith.constant 0 : i32
    return %arg0, %c0_i32 : i32, i32
  }
  func.func @transform_1(%arg0: i32) -> (i32, i32) {
    %c0_i32 = arith.constant 0 : i32
    %c0_i32_0 = arith.constant 0 : i32
    %c0_i32_1 = arith.constant 0 : i32
    return %c0_i32, %c0_i32_0 : i32, i32
  }
  func.func @transform_2(%arg0: i32) -> (i32, i32, i32) {
    %c0_i32 = arith.constant 0 : i32
    %c0_i32_0 = arith.constant 0 : i32
    %c0_i32_1 = arith.constant 0 : i32
    return %arg0, %c0_i32, %c0_i32_0 : i32, i32, i32
  }
}

</mosaic_0001>

<bundles_post_ra>
// kernel: tpu_custom_call.1
= control target key start
LH: loop header
LB: loop body
LE: loop exit
PB: predicated region body
PF: predicated region fallthrough
CT: control target
= control target key end

     0   :  { %s368_s0 = inlined_call_operand.vmem [shape: f32[8,256], index: 0, kind: input, shape index: {}]   ;;  %s369_s1 = inlined_call_operand.vmem [shape: f32[256,64], index: 1, kind: input, shape index: {}]   ;;  %s370_s2 = inlined_call_operand.hbm [shape: f32[2,8,64], index: 2, kind: output, shape index: {}]  }
   0x1   :  { %v30_v0 = vld [vmem:[%s369_s1 + $0x80] sm:$0xff]  ;;  %v31_v1 = vld [vmem:[%s369_s1 + $0x88] sm:$0xff]  ;;  %v32_v5 = vld [vmem:[%s369_s1 + $0x90] sm:$0xff] }
   0x2   :  { %v14_v2 = vld [vmem:[%s369_s1] sm:$0xff]  ;;  %v175_v3 = vpack.c.bf16 %v31_v1, %v30_v0  ;;  %v15_v4 = vld [vmem:[%s369_s1 + $0x8] sm:$0xff]  ;;  %v33_v6 = vld [vmem:[%s369_s1 + $0x98] sm:$0xff] }
   0x3   :  { %v177_v7 = vpack.c.bf16 %v15_v4, %v14_v2  ;;  %v179_v8 = vpack.c.bf16 %v33_v6, %v32_v5  ;;  %v16_v9 = vld [vmem:[%s369_s1 + $0x10] sm:$0xff]  ;;  %v17_v10 = vld [vmem:[%s369_s1 + $0x18] sm:$0xff]  ;;  %v34_v11 = vld [vmem:[%s369_s1 + $0xa0] sm:$0xff] }
   0x4   :  { %176 = vmatprep.subr.bf16.mxu0 %v175_v3  ;;  %v35_v12 = vld [vmem:[%s369_s1 + $0xa8] sm:$0xff]  ;;  %v181_v13 = vpack.c.bf16 %v17_v10, %v16_v9  ;;  %v18_v15 = vld [vmem:[%s369_s1 + $0x20] sm:$0xff]  ;;  %v36_v17 = vld [vmem:[%s369_s1 + $0xb0] sm:$0xff] }
   0x5   :  { %178 = vmatpush3.bf16.msra.mxu0 %v177_v7  ;;  %v183_v14 = vpack.c.bf16 %v35_v12, %v34_v11  ;;  %v19_v16 = vld [vmem:[%s369_s1 + $0x28] sm:$0xff]  ;;  %v37_v18 = vld [vmem:[%s369_s1 + $0xb8] sm:$0xff]  ;;  %v20_v21 = vld [vmem:[%s369_s1 + $0x30] sm:$0xff] }
   0x6   :  { %180 = vmatprep.subr.bf16.mxu0 %v179_v8  ;;  %v185_v19 = vpack.c.bf16 %v19_v16, %v18_v15  ;;  %v187_v20 = vpack.c.bf16 %v37_v18, %v36_v17  ;;  %v21_v22 = vld [vmem:[%s369_s1 + $0x38] sm:$0xff]  ;;  %v38_v23 = vld [vmem:[%s369_s1 + $0xc0] sm:$0xff]  ;;  %v39_v24 = vld [vmem:[%s369_s1 + $0xc8] sm:$0xff] }
   0x7   :  { %v13_v25 = vld [vmem:[%s368_s0 + $0x8] sm:$0xff] }
   0x8   :  { %110 = vmatprep.mubr.f32.mxu0 %v13_v25 }
   0x9   :  { %182 = vmatpush3.bf16.msra.mxu0 %v181_v13 }
   0xa   :  { %184 = vmatprep.subr.bf16.mxu0 %v183_v14 }
   0xb   :  { %7 = vsyncpa [#allocation3], 0  ;;  %v189_v26 = vpack.c.bf16 %v21_v22, %v20_v21  ;;  %v191_v27 = vpack.c.bf16 %v39_v24, %v38_v23  ;;  %v22_v28 = vld [vmem:[%s369_s1 + $0x40] sm:$0xff]  ;;  %v23_v29 = vld [vmem:[%s369_s1 + $0x48] sm:$0xff]  ;;  %vm117_vm0 = vcmask 519168   ;;  %v235_v50 = vmov 0.0  }
   0xc   :  { %v40_v30 = vld [vmem:[%s369_s1 + $0xd0] sm:$0xff]  ;;  %v41_v31 = vld [vmem:[%s369_s1 + $0xd8] sm:$0xff]  ;;  %v193_v32 = vpack.c.bf16 %v23_v29, %v22_v28  ;;  %v42_v36 = vld [vmem:[%s369_s1 + $0xe0] sm:$0xff]  ;;  %122 = vst.msk [vmem:[#allocation2 + $0x4] sm:$0xf] %vm117_vm0, %v235_v50  ;;  %s236_s21 = smov [#allocation2]  }
   0xd   :  { %186 = vmatpush3.bf16.msra.mxu0 %v185_v19  ;;  %v195_v33 = vpack.c.bf16 %v41_v31, %v40_v30  ;;  %v24_v34 = vld [vmem:[%s369_s1 + $0x50] sm:$0xff]  ;;  %v25_v35 = vld [vmem:[%s369_s1 + $0x58] sm:$0xff]  ;;  %v43_v37 = vld [vmem:[%s369_s1 + $0xe8] sm:$0xff]  ;;  %123 = vst.msk [vmem:[#allocation2 + $0xc] sm:$0xf] %vm117_vm0, %v235_v50  ;;  %s129_s22 = sshll.u32 %s236_s21, 4  ;;  %s130_s22 = int_to_ptr.vmem [resolvable:$true] %s129_s22 }
   0xe   :  { %188 = vmatprep.subr.bf16.mxu0 %v187_v20  ;;  %v197_v38 = vpack.c.bf16 %v25_v35, %v24_v34  ;;  %v199_v39 = vpack.c.bf16 %v43_v37, %v42_v36  ;;  %v26_v40 = vld [vmem:[%s369_s1 + $0x60] sm:$0xff]  ;;  %v27_v41 = vld [vmem:[%s369_s1 + $0x68] sm:$0xff]  ;;  %v44_v42 = vld [vmem:[%s369_s1 + $0xf0] sm:$0xff]  ;;  %vm120_vm1 = vcmask 523268   ;;  %p216_p1 = scmp.lt.s32.totalorder %s130_s22, %s130_s22 }
   0xf   :  { %v45_v43 = vld [vmem:[%s369_s1 + $0xf8] sm:$0xff]  ;;  %v201_v44 = vpack.c.bf16 %v27_v41, %v26_v40  ;;  %v28_v46 = vld [vmem:[%s369_s1 + $0x70] sm:$0xff]  ;;  %v12_v49 = vld [vmem:[%s368_s0] sm:$0xff] }
  0x10   :  { %v203_v45 = vpack.c.bf16 %v45_v43, %v44_v42  ;;  %v29_v47 = vld [vmem:[%s369_s1 + $0x78] sm:$0xff]  ;;  %s211_s1 = scalar_lea.vmem %s130_s22, 256 }
  0x11   :  { %190 = vmatpush3.bf16.msra.mxu0 %v189_v26  ;;  %v205_v48 = vpack.c.bf16 %v29_v47, %v28_v46  ;;  %p212_p0 = scmp.ne.s32.totalorder %s130_s22, %s211_s1  ;;  %p217_p2 = scmp.lt.s32.totalorder %s211_s1, %s211_s1 }
  0x12   :  { %192 = vmatprep.subr.bf16.mxu0 %v191_v27 }
  0x13   :  { %p218_p3 = por %p217_p2, %p216_p1 }
  0x15   :  { %194 = vmatpush3.bf16.msra.mxu0 %v193_v32  ;;  %p219_p4 = pnand %p218_p3, %p212_p0 }
  0x16   :  { %196 = vmatprep.subr.bf16.mxu0 %v195_v33 }
  0x19   :  { %198 = vmatpush3.bf16.msra.mxu0 %v197_v38 }
  0x1a   :  { %200 = vmatprep.subr.bf16.mxu0 %v199_v39 }
  0x1d   :  { %202 = vmatpush3.bf16.msra.mxu0 %v201_v44 }
  0x1e   :  { %204 = vmatprep.subr.bf16.mxu0 %v203_v45 }
  0x21   :  { %206 = vmatpush3.bf16.msra.mxu0 %v205_v48 }
  0x24   :  { %111 = vmatmul.mubr.f32.vlgmr.msra.gmra.mrb[0].mxu0 %v12_v49 }
  0xf7   :  { %v172_v51 = vpop.f32.mrb[0].mxu0 }
  0xf8   :  { %v173_v52 = vpop.f32.mrb[1].mxu0 }
  0xf9   :  { %v174_v53 = vadd.f32 %v173_v52, %v172_v51 }
  0xfb   :  { %v116_v54 = vmul.f32 0.25, %v174_v53 }
  0xfd   :  { %118 = vst.msk [vmem:[#allocation2] sm:$0xf] %vm117_vm0, %v116_v54 }
  0xfe   :  { %121 = vst.msk [vmem:[#allocation2 + $0x4] sm:$0xf0] %vm120_vm1, %v116_v54 }
  0xff   :  { %222 = shalt.err (!%p219_p4)
}
 0x100   :  { %s223_s24 = scalar_lea.hbm %s370_s2, 256 }
 0x101   :  { %p224_p5 = scmp.ne.s32.totalorder %s370_s2, %s223_s24  ;;  %p227_p6 = scmp.lt.u32.totalorder %s223_s24, %s370_s2 }
 0x103   :  { %p229_p7 = pnand %p227_p6, %p224_p5 }
 0x105   :  { %232 = shalt.err (!%p229_p7)
}
 0x106   :  { %s237_s29 = smov 128   ;;  %s238_s30 = smov 8  }
 0x107   :  { %135 = dma.vmem_to_hbm [thread:$0]  %s130_s22, 256, %s370_s2, [#allocation3], %s237_s29, %s237_s29, %s238_s30  }
 0x108   :  { %233 = dma.done.wait [#allocation3], 256  }
 0x109   :  { %234 = vsyncadd [#allocation3], 4294967040 }
 0x10a   :  { %139 = vsyncpa [#allocation3], 1 }

</bundles_post_ra>
